<compile_context>
chip_gen: v5e
topology: v5e:2x2
jax: 0.10.0
libtpu: 0.0.40
codegen_flags: <defaults>
</compile_context>

<pallas_src>
import jax
import jax.numpy as jnp
from jax.experimental import pallas as pl
from jax.experimental.pallas import tpu as pltpu


def _round_up(x, m):
    return ((x + m - 1) // m) * m


def _decoder_kernel(pts_ref, cbias_ref,
                    w1p_ref, w2_ref, w3_ref,
                    w4p_ref, w5_ref, w6_ref,
                    b25_ref, b36_ref,
                    out_ref):
    pts = pts_ref[...]          # (3, T) f32 grid-point tile, T points on lanes
    cb = cbias_ref[0]           # (H, 2): [:,0] = w1[:,:C]@code+b1, [:,1] = w4[:,:C]@code+b4
    b25 = b25_ref[...]          # (H, 2): [:,0] = b2, [:,1] = b5
    b36 = b36_ref[...]          # (3, 2): [:,0] = b3, [:,1] = b6

    def coord_mix(wp_ref, coords):
        # (H, 3) x (3, T) contraction as 3 broadcasted VPU FMAs.  Rides in
        # otherwise-idle VALU slots under the MXU-bound (H, H) matmuls, so it
        # is effectively free; a K=3 MXU matmul would use <3% of the array.
        return (wp_ref[:, 0:1] * coords[0:1, :]
                + wp_ref[:, 1:2] * coords[1:2, :]
                + wp_ref[:, 2:3] * coords[2:3, :])

    def fold(wp_ref, coords, cbias_col, w_hh_ref, b_hh, w_out_ref, b_out):
        # layer 1: coordinate mix + (hoisted codeword-dependent) bias, f32
        h = jnp.maximum(coord_mix(wp_ref, coords) + cbias_col, 0.0)      # (H, T)
        # layer 2: dominant (H, H) matmul in bf16, f32 accumulation
        h = jnp.dot(w_hh_ref[...], h.astype(jnp.bfloat16),
                    preferred_element_type=jnp.float32) + b_hh           # (H, T)
        h = jnp.maximum(h, 0.0)
        # layer 3: (3, H) output projection kept in f32
        return jnp.dot(w_out_ref[...], h,
                       preferred_element_type=jnp.float32) + b_out       # (3, T)

    f1 = fold(w1p_ref, pts, cb[:, 0:1], w2_ref, b25[:, 0:1], w3_ref, b36[:, 0:1])
    out = fold(w4p_ref, f1, cb[:, 1:2], w5_ref, b25[:, 1:2], w6_ref, b36[:, 1:2])
    out_ref[0] = out.astype(out_ref.dtype)


def foldnet_decoder_forward(x, grid_pts, params, tile_m=None):
    """x: (B, 1, C) codeword; grid_pts: (M, 3) fixed folding grid.

    params: dict with conv weights w1 (H, C+3), w2 (H, H), w3 (3, H),
    w4 (H, C+3), w5 (H, H), w6 (3, H) and biases b1..b6.
    Returns (B, M, 3), matching FoldNet_Decoder.forward(x).
    """
    B, one, C = x.shape
    assert one == 1
    M, D = grid_pts.shape
    assert D == 3
    H = params["w2"].shape[0]

    # Pad the point axis to a lane-aligned multiple of 128 (real model:
    # M = 45*45 = 2025 -> 2048) so every output tile is an unmasked,
    # lane-dense store and the j axis really pipelines / splits across
    # v7x's two TensorCores.  Padded points are sliced off at the end.
    if tile_m is None:
        Mp = _round_up(M, 128)
        tile_m = next(c for c in (512, 256, 128) if Mp % c == 0)
    else:
        assert tile_m % 128 == 0
        Mp = _round_up(M, tile_m)
    assert Mp % tile_m == 0

    f32 = jnp.float32
    bf16 = jnp.bfloat16

    pts_t = jnp.transpose(grid_pts, (1, 0)).astype(f32)           # (3, M) lane-dense
    pts_t = jnp.pad(pts_t, ((0, 0), (0, Mp - M)))                 # (3, Mp)

    # Hoist the per-batch codeword matvec out of the kernel: it depends only
    # on b, so fold it into the layer-1 bias once here instead of re-running
    # an N=1 MXU matvec (and keeping 2 MiB of (H, C) weights resident in
    # VMEM) every (b, j) grid step.
    code = x[:, 0, :].astype(f32)                                 # (B, C)
    w1 = params["w1"].astype(f32)
    w4 = params["w4"].astype(f32)
    cb1 = code @ w1[:, :C].T + params["b1"].astype(f32)           # (B, H)
    cb4 = code @ w4[:, :C].T + params["b4"].astype(f32)           # (B, H)
    cbias = jnp.stack([cb1, cb4], axis=-1)                        # (B, H, 2)

    # Pack the remaining bias columns so they don't each occupy a lane-padded
    # (H, 128) VMEM slab.
    b25 = jnp.stack([params["b2"].astype(f32), params["b5"].astype(f32)], axis=-1)  # (H, 2)
    b36 = jnp.stack([params["b3"].astype(f32), params["b6"].astype(f32)], axis=-1)  # (3, 2)

    args = (
        pts_t, cbias,
        w1[:, C:], params["w2"].astype(bf16), params["w3"].astype(f32),   # folding1
        w4[:, C:], params["w5"].astype(bf16), params["w6"].astype(f32),   # folding2
        b25, b36,
    )

    def wspec(shape):
        # Grid-invariant weights / packed biases: one full-extent block.
        # (Further option: pipeline_mode=pl.Buffered(1) since the block index
        #  never changes; budget already fits comfortably without it.)
        zeros = (0,) * len(shape)
        return pl.BlockSpec(shape, lambda b, j: zeros)

    in_specs = [
        pl.BlockSpec((3, tile_m), lambda b, j: (0, j)),      # grid-point tile (per j)
        pl.BlockSpec((1, H, 2), lambda b, j: (b, 0, 0)),     # codeword-derived biases (per b)
        wspec((H, 3)), wspec((H, H)), wspec((3, H)),         # folding1: w1p, w2, w3
        wspec((H, 3)), wspec((H, H)), wspec((3, H)),         # folding2: w4p, w5, w6
        wspec((H, 2)), wspec((3, 2)),                        # packed biases
    ]

    out_chm = pl.pallas_call(
        _decoder_kernel,
        out_shape=jax.ShapeDtypeStruct((B, 3, Mp), f32),
        grid_spec=pltpu.PrefetchScalarGridSpec(
            num_scalar_prefetch=0,
            grid=(B, Mp // tile_m),
            in_specs=in_specs,
            out_specs=pl.BlockSpec((1, 3, tile_m), lambda b, j: (b, 0, j)),
        ),
        compiler_params=pltpu.CompilerParams(
            # Every (b, j) step writes its own output tile -> fully parallel
            # (lets v7x shard the grid across its two TensorCores).
            dimension_semantics=("parallel", "parallel"),
            # Explicit VMEM budget: bf16 (H,H) weights + packed biases +
            # (H, tile_m) activations fit well inside 32 MiB even at the real
            # sizes (H=C=512, tile_m=512) on v5e (16 MiB default scoped) and
            # v7x (64 MiB physical).
            vmem_limit_bytes=32 * 1024 * 1024,
        ),
    )(*args)

    # (B, 3, Mp) -> (B, Mp, 3) -> slice padded points back off.
    return jnp.transpose(out_chm, (0, 2, 1))[:, :M, :]


def foldnet_decoder_ref(x, grid_pts, params):
    """Pure-JAX (f32) reference mirroring the PyTorch module exactly."""
    B, _, C = x.shape
    M = grid_pts.shape[0]
    f32 = jnp.float32
    code = jnp.broadcast_to(x.astype(f32), (B, M, C))
    pts = jnp.broadcast_to(grid_pts[None].astype(f32), (B, M, 3))

    def layer(h, w, b, relu=True):
        y = jnp.einsum("bmi,oi->bmo", h, w.astype(f32)) + b.astype(f32)
        return jnp.maximum(y, 0.0) if relu else y

    cat1 = jnp.concatenate([code, pts], axis=-1)
    h = layer(cat1, params["w1"], params["b1"])
    h = layer(h, params["w2"], params["b2"])
    f1 = layer(h, params["w3"], params["b3"], relu=False)
    cat2 = jnp.concatenate([code, f1], axis=-1)
    h = layer(cat2, params["w4"], params["b4"])
    h = layer(h, params["w5"], params["b5"])
    out = layer(h, params["w6"], params["b6"], relu=False)
    return out


if __name__ == "__main__":
    key = jax.random.PRNGKey(0)
    ks = jax.random.split(key, 16)

    # Small shapes consistent with the module (real sizes: C=H=512, M=45*45=2025).
    # M is deliberately NOT a multiple of 128 so the padding path the real
    # model hits is exercised: 600 -> padded 640, tile_m=128, j-grid of 5.
    B, C, H, M = 2, 64, 64, 600

    x = jax.random.normal(ks[0], (B, 1, C), dtype=jnp.float32)

    # TODO(synk): sphere.npy / gaussian.npy are unavailable; the fixed folding
    # grid is synthesized here as deterministic unit-sphere points instead of
    # the module's `np.load('sphere.npy') * 100000`.
    raw = jax.random.normal(ks[1], (M, 3), dtype=jnp.float32)
    grid_pts = raw / (jnp.linalg.norm(raw, axis=-1, keepdims=True) + 1e-6)

    s = 0.05
    params = {
        "w1": s * jax.random.normal(ks[2], (H, C + 3), dtype=jnp.float32),
        "b1": s * jax.random.normal(ks[3], (H,), dtype=jnp.float32),
        "w2": s * jax.random.normal(ks[4], (H, H), dtype=jnp.float32),
        "b2": s * jax.random.normal(ks[5], (H,), dtype=jnp.float32),
        "w3": s * jax.random.normal(ks[6], (3, H), dtype=jnp.float32),
        "b3": s * jax.random.normal(ks[7], (3,), dtype=jnp.float32),
        "w4": s * jax.random.normal(ks[8], (H, C + 3), dtype=jnp.float32),
        "b4": s * jax.random.normal(ks[9], (H,), dtype=jnp.float32),
        "w5": s * jax.random.normal(ks[10], (H, H), dtype=jnp.float32),
        "b5": s * jax.random.normal(ks[11], (H,), dtype=jnp.float32),
        "w6": s * jax.random.normal(ks[12], (3, H), dtype=jnp.float32),
        "b6": s * jax.random.normal(ks[13], (3,), dtype=jnp.float32),
    }

    out = jax.block_until_ready(foldnet_decoder_forward(x, grid_pts, params))
    ref = jax.block_until_ready(foldnet_decoder_ref(x, grid_pts, params))

    assert out.shape == (B, M, 3), out.shape
    # The (H, H) matmuls run in bf16 on the MXU (f32 accumulation), so the
    # tolerance vs. the pure-f32 reference is loosened accordingly.
    err = float(jnp.max(jnp.abs(out - ref)))
    assert err < 2e-2, err
    print("KERNEL_OK")
</pallas_src>

<mosaic_0001>
module attributes {stable_mosaic.version = 11 : i64} {
  func.func @_decoder_kernel(%arg0: i32, %arg1: i32, %arg2: memref<3x128xf32, #tpu.memory_space<vmem>>, %arg3: memref<1x64x2xf32, #tpu.memory_space<vmem>>, %arg4: memref<64x3xf32, #tpu.memory_space<vmem>>, %arg5: memref<64x64xbf16, #tpu.memory_space<vmem>>, %arg6: memref<3x64xf32, #tpu.memory_space<vmem>>, %arg7: memref<64x3xf32, #tpu.memory_space<vmem>>, %arg8: memref<64x64xbf16, #tpu.memory_space<vmem>>, %arg9: memref<3x64xf32, #tpu.memory_space<vmem>>, %arg10: memref<64x2xf32, #tpu.memory_space<vmem>>, %arg11: memref<3x2xf32, #tpu.memory_space<vmem>>, %arg12: memref<1x3x128xf32, #tpu.memory_space<vmem>>) attributes {dimension_semantics = [#tpu.dimension_semantics<parallel>, #tpu.dimension_semantics<parallel>], iteration_bounds = array<i64: 2, 5>, scalar_prefetch = 0 : i64, scratch_operands = 0 : i64, tpu.core_type = #tpu.core_type<tc>, window_params = [{transform_indices = @transform_0, window_bounds = array<i64: 3, 128>}, {transform_indices = @transform_1, window_bounds = array<i64: 1, 64, 2>}, {pipeline_mode = #tpu.pipeline_mode<synchronous>, transform_indices = @transform_2, window_bounds = array<i64: 64, 3>}, {pipeline_mode = #tpu.pipeline_mode<synchronous>, transform_indices = @transform_3, window_bounds = array<i64: 64, 64>}, {pipeline_mode = #tpu.pipeline_mode<synchronous>, transform_indices = @transform_4, window_bounds = array<i64: 3, 64>}, {pipeline_mode = #tpu.pipeline_mode<synchronous>, transform_indices = @transform_5, window_bounds = array<i64: 64, 3>}, {pipeline_mode = #tpu.pipeline_mode<synchronous>, transform_indices = @transform_6, window_bounds = array<i64: 64, 64>}, {pipeline_mode = #tpu.pipeline_mode<synchronous>, transform_indices = @transform_7, window_bounds = array<i64: 3, 64>}, {pipeline_mode = #tpu.pipeline_mode<synchronous>, transform_indices = @transform_8, window_bounds = array<i64: 64, 2>}, {pipeline_mode = #tpu.pipeline_mode<synchronous>, transform_indices = @transform_9, window_bounds = array<i64: 3, 2>}, {transform_indices = @transform_10, window_bounds = array<i64: 1, 3, 128>}]} {
    %c0 = arith.constant 0 : index
    %c0_0 = arith.constant 0 : index
    %0 = vector.load %arg2[%c0, %c0_0] : memref<3x128xf32, #tpu.memory_space<vmem>>, vector<3x128xf32>
    %c0_1 = arith.constant 0 : index
    %c0_2 = arith.constant 0 : index
    %c0_3 = arith.constant 0 : index
    %1 = vector.load %arg3[%c0_1, %c0_2, %c0_3] : memref<1x64x2xf32, #tpu.memory_space<vmem>>, vector<1x64x2xf32>
    %2 = vector.shape_cast %1 : vector<1x64x2xf32> to vector<64x2xf32>
    %c0_4 = arith.constant 0 : index
    %c0_5 = arith.constant 0 : index
    %3 = vector.load %arg10[%c0_4, %c0_5] : memref<64x2xf32, #tpu.memory_space<vmem>>, vector<64x2xf32>
    %c0_6 = arith.constant 0 : index
    %c0_7 = arith.constant 0 : index
    %4 = vector.load %arg11[%c0_6, %c0_7] : memref<3x2xf32, #tpu.memory_space<vmem>>, vector<3x2xf32>
    %5 = vector.extract_strided_slice %2 {offsets = [0, 0], sizes = [64, 1], strides = [1, 1]} : vector<64x2xf32> to vector<64x1xf32>
    %6 = vector.extract_strided_slice %3 {offsets = [0, 0], sizes = [64, 1], strides = [1, 1]} : vector<64x2xf32> to vector<64x1xf32>
    %7 = vector.extract_strided_slice %4 {offsets = [0, 0], sizes = [3, 1], strides = [1, 1]} : vector<3x2xf32> to vector<3x1xf32>
    %c0_8 = arith.constant 0 : index
    %c0_9 = arith.constant 0 : index
    %8 = vector.load %arg4[%c0_8, %c0_9] : memref<64x3xf32, #tpu.memory_space<vmem>>, vector<64x1xf32>
    %9 = vector.extract_strided_slice %0 {offsets = [0, 0], sizes = [1, 128], strides = [1, 1]} : vector<3x128xf32> to vector<1x128xf32>
    %10 = vector.broadcast %8 : vector<64x1xf32> to vector<64x128xf32>
    %11 = vector.broadcast %9 : vector<1x128xf32> to vector<64x128xf32>
    %12 = arith.mulf %10, %11 : vector<64x128xf32>
    %c0_10 = arith.constant 0 : index
    %c1 = arith.constant 1 : index
    %13 = vector.load %arg4[%c0_10, %c1] : memref<64x3xf32, #tpu.memory_space<vmem>>, vector<64x1xf32>
    %14 = vector.extract_strided_slice %0 {offsets = [1, 0], sizes = [1, 128], strides = [1, 1]} : vector<3x128xf32> to vector<1x128xf32>
    %15 = vector.broadcast %13 : vector<64x1xf32> to vector<64x128xf32>
    %16 = vector.broadcast %14 : vector<1x128xf32> to vector<64x128xf32>
    %17 = arith.mulf %15, %16 : vector<64x128xf32>
    %18 = arith.addf %12, %17 : vector<64x128xf32>
    %c0_11 = arith.constant 0 : index
    %c2 = arith.constant 2 : index
    %19 = vector.load %arg4[%c0_11, %c2] : memref<64x3xf32, #tpu.memory_space<vmem>>, vector<64x1xf32>
    %20 = vector.extract_strided_slice %0 {offsets = [2, 0], sizes = [1, 128], strides = [1, 1]} : vector<3x128xf32> to vector<1x128xf32>
    %21 = vector.broadcast %19 : vector<64x1xf32> to vector<64x128xf32>
    %22 = vector.broadcast %20 : vector<1x128xf32> to vector<64x128xf32>
    %23 = arith.mulf %21, %22 : vector<64x128xf32>
    %24 = arith.addf %18, %23 : vector<64x128xf32>
    %25 = vector.broadcast %5 : vector<64x1xf32> to vector<64x128xf32>
    %26 = arith.addf %24, %25 : vector<64x128xf32>
    %cst = arith.constant 0.000000e+00 : f32
    %27 = vector.broadcast %cst : f32 to vector<64x128xf32>
    %28 = arith.maximumf %26, %27 : vector<64x128xf32>
    %c0_12 = arith.constant 0 : index
    %c0_13 = arith.constant 0 : index
    %29 = vector.load %arg5[%c0_12, %c0_13] : memref<64x64xbf16, #tpu.memory_space<vmem>>, vector<64x64xbf16>
    %30 = arith.truncf %28 : vector<64x128xf32> to vector<64x128xbf16>
    %cst_14 = arith.constant dense<0.000000e+00> : vector<64x128xf32>
    %31 = tpu.matmul %29, %30, %cst_14 {dimension_numbers = #tpu.dot_dimension_numbers<[1], [0], [0], [1], [0, 0, 1, 1], [], []>} : vector<64x64xbf16>, vector<64x128xbf16>, vector<64x128xf32> -> vector<64x128xf32>
    %32 = vector.broadcast %6 : vector<64x1xf32> to vector<64x128xf32>
    %33 = arith.addf %31, %32 : vector<64x128xf32>
    %cst_15 = arith.constant 0.000000e+00 : f32
    %34 = vector.broadcast %cst_15 : f32 to vector<64x128xf32>
    %35 = arith.maximumf %33, %34 : vector<64x128xf32>
    %c0_16 = arith.constant 0 : index
    %c0_17 = arith.constant 0 : index
    %36 = vector.load %arg6[%c0_16, %c0_17] : memref<3x64xf32, #tpu.memory_space<vmem>>, vector<3x64xf32>
    %cst_18 = arith.constant dense<0.000000e+00> : vector<3x128xf32>
    %37 = tpu.matmul %36, %35, %cst_18 {dimension_numbers = #tpu.dot_dimension_numbers<[1], [0], [0], [1], [0, 0, 1, 1], [], []>} : vector<3x64xf32>, vector<64x128xf32>, vector<3x128xf32> -> vector<3x128xf32>
    %38 = vector.broadcast %7 : vector<3x1xf32> to vector<3x128xf32>
    %39 = arith.addf %37, %38 : vector<3x128xf32>
    %40 = vector.extract_strided_slice %2 {offsets = [0, 1], sizes = [64, 1], strides = [1, 1]} : vector<64x2xf32> to vector<64x1xf32>
    %41 = vector.extract_strided_slice %3 {offsets = [0, 1], sizes = [64, 1], strides = [1, 1]} : vector<64x2xf32> to vector<64x1xf32>
    %42 = vector.extract_strided_slice %4 {offsets = [0, 1], sizes = [3, 1], strides = [1, 1]} : vector<3x2xf32> to vector<3x1xf32>
    %c0_19 = arith.constant 0 : index
    %c0_20 = arith.constant 0 : index
    %43 = vector.load %arg7[%c0_19, %c0_20] : memref<64x3xf32, #tpu.memory_space<vmem>>, vector<64x1xf32>
    %44 = vector.extract_strided_slice %39 {offsets = [0, 0], sizes = [1, 128], strides = [1, 1]} : vector<3x128xf32> to vector<1x128xf32>
    %45 = vector.broadcast %43 : vector<64x1xf32> to vector<64x128xf32>
    %46 = vector.broadcast %44 : vector<1x128xf32> to vector<64x128xf32>
    %47 = arith.mulf %45, %46 : vector<64x128xf32>
    %c0_21 = arith.constant 0 : index
    %c1_22 = arith.constant 1 : index
    %48 = vector.load %arg7[%c0_21, %c1_22] : memref<64x3xf32, #tpu.memory_space<vmem>>, vector<64x1xf32>
    %49 = vector.extract_strided_slice %39 {offsets = [1, 0], sizes = [1, 128], strides = [1, 1]} : vector<3x128xf32> to vector<1x128xf32>
    %50 = vector.broadcast %48 : vector<64x1xf32> to vector<64x128xf32>
    %51 = vector.broadcast %49 : vector<1x128xf32> to vector<64x128xf32>
    %52 = arith.mulf %50, %51 : vector<64x128xf32>
    %53 = arith.addf %47, %52 : vector<64x128xf32>
    %c0_23 = arith.constant 0 : index
    %c2_24 = arith.constant 2 : index
    %54 = vector.load %arg7[%c0_23, %c2_24] : memref<64x3xf32, #tpu.memory_space<vmem>>, vector<64x1xf32>
    %55 = vector.extract_strided_slice %39 {offsets = [2, 0], sizes = [1, 128], strides = [1, 1]} : vector<3x128xf32> to vector<1x128xf32>
    %56 = vector.broadcast %54 : vector<64x1xf32> to vector<64x128xf32>
    %57 = vector.broadcast %55 : vector<1x128xf32> to vector<64x128xf32>
    %58 = arith.mulf %56, %57 : vector<64x128xf32>
    %59 = arith.addf %53, %58 : vector<64x128xf32>
    %60 = vector.broadcast %40 : vector<64x1xf32> to vector<64x128xf32>
    %61 = arith.addf %59, %60 : vector<64x128xf32>
    %cst_25 = arith.constant 0.000000e+00 : f32
    %62 = vector.broadcast %cst_25 : f32 to vector<64x128xf32>
    %63 = arith.maximumf %61, %62 : vector<64x128xf32>
    %c0_26 = arith.constant 0 : index
    %c0_27 = arith.constant 0 : index
    %64 = vector.load %arg8[%c0_26, %c0_27] : memref<64x64xbf16, #tpu.memory_space<vmem>>, vector<64x64xbf16>
    %65 = arith.truncf %63 : vector<64x128xf32> to vector<64x128xbf16>
    %cst_28 = arith.constant dense<0.000000e+00> : vector<64x128xf32>
    %66 = tpu.matmul %64, %65, %cst_28 {dimension_numbers = #tpu.dot_dimension_numbers<[1], [0], [0], [1], [0, 0, 1, 1], [], []>} : vector<64x64xbf16>, vector<64x128xbf16>, vector<64x128xf32> -> vector<64x128xf32>
    %67 = vector.broadcast %41 : vector<64x1xf32> to vector<64x128xf32>
    %68 = arith.addf %66, %67 : vector<64x128xf32>
    %cst_29 = arith.constant 0.000000e+00 : f32
    %69 = vector.broadcast %cst_29 : f32 to vector<64x128xf32>
    %70 = arith.maximumf %68, %69 : vector<64x128xf32>
    %c0_30 = arith.constant 0 : index
    %c0_31 = arith.constant 0 : index
    %71 = vector.load %arg9[%c0_30, %c0_31] : memref<3x64xf32, #tpu.memory_space<vmem>>, vector<3x64xf32>
    %cst_32 = arith.constant dense<0.000000e+00> : vector<3x128xf32>
    %72 = tpu.matmul %71, %70, %cst_32 {dimension_numbers = #tpu.dot_dimension_numbers<[1], [0], [0], [1], [0, 0, 1, 1], [], []>} : vector<3x64xf32>, vector<64x128xf32>, vector<3x128xf32> -> vector<3x128xf32>
    %73 = vector.broadcast %42 : vector<3x1xf32> to vector<3x128xf32>
    %74 = arith.addf %72, %73 : vector<3x128xf32>
    %c0_33 = arith.constant 0 : index
    %c0_34 = arith.constant 0 : index
    %c0_35 = arith.constant 0 : index
    %75 = vector.load %arg12[%c0_33, %c0_34, %c0_35] : memref<1x3x128xf32, #tpu.memory_space<vmem>>, vector<1x3x128xf32>
    %76 = vector.shape_cast %75 : vector<1x3x128xf32> to vector<3x128xf32>
    %77 = vector.shape_cast %74 : vector<3x128xf32> to vector<1x3x128xf32>
    tpu.vector_store %arg12[%c0_33, %c0_34, %c0_35], %77 {strides = array<i32>} : memref<1x3x128xf32, #tpu.memory_space<vmem>>, vector<1x3x128xf32>,
    return
  }
  func.func @transform_0(%arg0: i32, %arg1: i32) -> (i32, i32) {
    %c0_i32 = arith.constant 0 : i32
    %c0_i32_0 = arith.constant 0 : i32
    return %c0_i32, %arg1 : i32, i32
  }
  func.func @transform_1(%arg0: i32, %arg1: i32) -> (i32, i32, i32) {
    %c0_i32 = arith.constant 0 : i32
    %c0_i32_0 = arith.constant 0 : i32
    %c0_i32_1 = arith.constant 0 : i32
    return %arg0, %c0_i32, %c0_i32_0 : i32, i32, i32
  }
  func.func @transform_2(%arg0: i32, %arg1: i32) -> (i32, i32) {
    %c0_i32 = arith.constant 0 : i32
    %c0_i32_0 = arith.constant 0 : i32
    %c0_i32_1 = arith.constant 0 : i32
    return %c0_i32, %c0_i32_0 : i32, i32
  }
  func.func @transform_3(%arg0: i32, %arg1: i32) -> (i32, i32) {
    %c0_i32 = arith.constant 0 : i32
    %c0_i32_0 = arith.constant 0 : i32
    %c0_i32_1 = arith.constant 0 : i32
    return %c0_i32, %c0_i32_0 : i32, i32
  }
  func.func @transform_4(%arg0: i32, %arg1: i32) -> (i32, i32) {
    %c0_i32 = arith.constant 0 : i32
    %c0_i32_0 = arith.constant 0 : i32
    %c0_i32_1 = arith.constant 0 : i32
    return %c0_i32, %c0_i32_0 : i32, i32
  }
  func.func @transform_5(%arg0: i32, %arg1: i32) -> (i32, i32) {
    %c0_i32 = arith.constant 0 : i32
    %c0_i32_0 = arith.constant 0 : i32
    %c0_i32_1 = arith.constant 0 : i32
    return %c0_i32, %c0_i32_0 : i32, i32
  }
  func.func @transform_6(%arg0: i32, %arg1: i32) -> (i32, i32) {
    %c0_i32 = arith.constant 0 : i32
    %c0_i32_0 = arith.constant 0 : i32
    %c0_i32_1 = arith.constant 0 : i32
    return %c0_i32, %c0_i32_0 : i32, i32
  }
  func.func @transform_7(%arg0: i32, %arg1: i32) -> (i32, i32) {
    %c0_i32 = arith.constant 0 : i32
    %c0_i32_0 = arith.constant 0 : i32
    %c0_i32_1 = arith.constant 0 : i32
    return %c0_i32, %c0_i32_0 : i32, i32
  }
  func.func @transform_8(%arg0: i32, %arg1: i32) -> (i32, i32) {
    %c0_i32 = arith.constant 0 : i32
    %c0_i32_0 = arith.constant 0 : i32
    %c0_i32_1 = arith.constant 0 : i32
    return %c0_i32, %c0_i32_0 : i32, i32
  }
  func.func @transform_9(%arg0: i32, %arg1: i32) -> (i32, i32) {
    %c0_i32 = arith.constant 0 : i32
    %c0_i32_0 = arith.constant 0 : i32
    %c0_i32_1 = arith.constant 0 : i32
    return %c0_i32, %c0_i32_0 : i32, i32
  }
  func.func @transform_10(%arg0: i32, %arg1: i32) -> (i32, i32, i32) {
    %c0_i32 = arith.constant 0 : i32
    %c0_i32_0 = arith.constant 0 : i32
    return %arg0, %c0_i32, %arg1 : i32, i32, i32
  }
}

</mosaic_0001>

<bundles_post_ra>
// kernel: tpu_custom_call.1
= control target key start
LH: loop header
LB: loop body
LE: loop exit
PB: predicated region body
PF: predicated region fallthrough
CT: control target
= control target key end

     0   :  { %s1470_s13 = smov 0   ;;  %s1472_s14 = smov 0   ;;  %s1825_s0 = inlined_call_operand.vmem [shape: f32[3,640], index: 0, kind: input, shape index: {}]   ;;  %s1826_s1 = inlined_call_operand.vmem [shape: f32[2,64,2], index: 1, kind: input, shape index: {}]   ;;  %s1827_s2 = inlined_call_operand.vmem [shape: f32[64,3], index: 2, kind: input, shape index: {}]   ;;  %s1828_s3 = inlined_call_operand.vmem [shape: bf16[64,64], index: 3, kind: input, shape index: {}]   ;;  %s1829_s4 = inlined_call_operand.vmem [shape: f32[3,64], index: 4, kind: input, shape index: {}]   ;;  %s1830_s5 = inlined_call_operand.vmem [shape: f32[64,3], index: 5, kind: input, shape index: {}]   ;;  %s1831_s6 = inlined_call_operand.vmem [shape: bf16[64,64], index: 6, kind: input, shape index: {}]   ;;  %s1832_s7 = inlined_call_operand.vmem [shape: f32[3,64], index: 7, kind: input, shape index: {}]   ;;  %s1833_s8 = inlined_call_operand.vmem [shape: f32[64,2], index: 8, kind: input, shape index: {}]   ;;  %s1834_s9 = inlined_call_operand.vmem [shape: f32[3,2], index: 9, kind: input, shape index: {}]   ;;  %s1835_s10 = inlined_call_operand.vmem [shape: f32[2,3,640], index: 10, kind: output, shape index: {}]  }
   0x1   :  { %s1474_s15 = smov 0   ;;  %s1476_s16 = smov 0  }
   0x2   :  { %s1478_s17 = smov 0  }
   0x3 LB: > { %s29_s18 = sadd.s32 1, %s1402_s15  ;;  %s32_s19 = sadd.s32 1, %s1406_s16  ;;  %s1410_s17 = sphi %s1478_s17, %s20_s17   ;;  %s1406_s16 = sphi %s1476_s16, %s1839_s16   ;;  %s1402_s15 = sphi %s1474_s15, %s1838_s15   ;;  %s1398_s14 = sphi %s1472_s14, %s1837_s14   ;;  %s1394_s13 = sphi %s1470_s13, %s1836_s13  }
   0x4   : > { %p30_p0 = scmp.ge.s32.totalorder %s29_s18, 5  ;;  %p1219_p1 = scmp.ge.s32.totalorder %s1410_s17, 1 }
   0x5   : > { %p335_p2 = scmp.lt.s32.totalorder %s1410_s17, 11 }
   0x6   : > { %s1841_s18 = smov (%p30_p0, %s29_s18), 0  ;;  %s1843_s19 = smov (!%p30_p0, %s32_s19), %s1406_s16 }
   0x7   : > { %p336_p3 = pnand %p1219_p1, %p335_p2  ;;  %p34_p4 = scmp.ge.s32.totalorder %s1843_s19, 2 }
   0x8   : > { %p384_p5 = scmp.lt.s32.totalorder (!%p336_p3), %s1398_s14, 1  ;;  %p380_p6 = scmp.lt.s32.totalorder (!%p336_p3), %s1394_s13, 4 }
   0x9   : > { %s1845_s19 = smov (%p34_p4, %s1843_s19), 0  ;;  %339 = sbr.rel (%p336_p3) target bundleno = 898 (0x382), region = 60 }
   0xe   : > { %v422_v0 = vld [vmem:[%s1827_s2 + $0x30] sm:$0xff]  ;;  %v419_v1 = vld [vmem:[%s1827_s2 + $0x18] sm:$0xff]  ;;  %v1412_v2 = vmov 2   ;;  %v1413_v3 = vmov 1   ;;  %v421_v5 = vld [vmem:[%s1827_s2 + $0x28] sm:$0xff]  ;;  %v1414_v8 = vmov 0  }
   0xf   : > { %1340 = vset.pattern.permute.xlu0 %v1412_v2  ;;  %1330 = vset.pattern.permute.xlu2 %v1412_v2  ;;  %v423_v4 = vld [vmem:[%s1827_s2 + $0x38] sm:$0xff]  ;;  %v420_v6 = vld [vmem:[%s1827_s2 + $0x20] sm:$0xff]  ;;  %s1847_s14 = smov (!%p384_p5, %s1398_s14), 1  ;;  %v418_v11 = vld [vmem:[%s1827_s2 + $0x10] sm:$0xff]  ;;  %s1849_s13 = smov (!%p380_p6, %s1394_s13), 4  ;;  %vm699_vm0 = vcmask 523264  }
  0x10   : > { %1329 = vset.pattern.permute.xlu1 %v1413_v3  ;;  %547 = vperm.xlu2 %1330, %v422_v0   ;;  %v416_v7 = vld [vmem:[%s1827_s2] sm:$0xff]  ;;  %s1268_s12 = sshll.u32 %s1847_s14, 6  ;;  %v1574_v15 = vld [vmem:[%s1833_s8 + $0x28] sm:$0xff]  ;;  %v1583_v17 = vld [vmem:[%s1833_s8 + $0x10] sm:$0xff]  ;;  %s1220_s27 = sshll.u32 %s1849_s13, 2 }
  0x11   : > { %498 = vperm.xlu1 %1329, %v422_v0   ;;  %535 = vperm.xlu0 %1340, %v419_v1   ;;  %s1539_s22 = scalar_lea.vmem %s1826_s1, %s1268_s12  ;;  %v417_v16 = vld [vmem:[%s1827_s2 + $0x8] sm:$0xff]  ;;  %v1591_v18 = vld [vmem:[%s1834_s9] sm:$0x7]  ;;  %v1624_v26 = vld [vmem:[%s1833_s8 + $0x30] sm:$0xff]  ;;  %s383_s30 = scalar_lea.vmem %s1825_s0, %s1220_s27 }
  0x12   : > { %v1542_v9 = vld [vmem:[%s1539_s22 + $0x38] sm:$0xff]  ;;  %v1545_v10 = vld [vmem:[%s1539_s22 + $0x30] sm:$0xff]  ;;  %v1562_v13 = vld [vmem:[%s1539_s22 + $0x20] sm:$0xff]  ;;  %s1285_s20 = smul.u32 5, %s1847_s14 }
  0x13   : > { %v1558_v12 = vld [vmem:[%s1539_s22 + $0x18] sm:$0xff]  ;;  %v1565_v14 = vld [vmem:[%s1539_s22 + $0x28] sm:$0xff]  ;;  %v1595_v19 = vld [vmem:[%s1539_s22 + $0x10] sm:$0xff] }
  0x14   : > { %v1603_v20 = vld [vmem:[%s1830_s5 + $0x28] sm:$0xff]  ;;  %v1610_v23 = vld [vmem:[%s1539_s22] sm:$0xff]  ;;  %v1629_v27 = vld [vmem:[%s1833_s8 + $0x38] sm:$0xff]  ;;  %s394_s21 = sadd.s32 %s1285_s20, %s1849_s13 }
  0x15   : > { %v1607_v22 = vld [vmem:[%s1539_s22 + $0x8] sm:$0xff]  ;;  %v784_v29 = vld [vmem:[%s1830_s5 + $0x30] sm:$0xff]  ;;  %v1642_v30 = vld [vmem:[%s1833_s8 + $0x18] sm:$0xff]  ;;  %s1223_s23 = sshll.u32 %s394_s21, 2 }
  0x16   : > { %v1617_v24 = vld [vmem:[%s1830_s5 + $0x8] sm:$0xff]  ;;  %v1647_v31 = vld [vmem:[%s1833_s8 + $0x20] sm:$0xff]  ;;  %v785_v40 = vld [vmem:[%s1830_s5 + $0x38] sm:$0xff]  ;;  %s396_s26 = scalar_lea.vmem %s1835_s10, %s1223_s23 }
  0x17   : > { %v1657_v35 = vld [vmem:[%s1833_s8] sm:$0xff]  ;;  %v1662_v36 = vld [vmem:[%s1833_s8 + $0x8] sm:$0xff] }
  0x18   : > { %551 = vperm.xlu2 %1330, %v423_v4   ;;  %v398_v44 = vld [vmem:[%s383_s30] sm:$0x7] }
  0x19   : > { %502 = vperm.xlu1 %1329, %v423_v4   ;;  %1341 = vset.pattern.permute.xlu0 %v1413_v3  ;;  %v1681_v47 = vperm.slane %v398_v44, 1  ;;  %v1683_v48 = vperm.slane %v398_v44, 0  ;;  %v1687_v51 = vperm.slane %v398_v44, 2 }
  0x1a   : > { %494 = vperm.xlu0 %1341, %v421_v5  }
  0x20   : > { %1332 = vset.pattern.permute.xlu2 %v1413_v3 }
  0x21   : > { %1331 = vset.pattern.permute.xlu1 %v1414_v8  ;;  %490 = vperm.xlu2 %1332, %v420_v6  }
  0x22   : > { %451 = vperm.xlu1 %1331, %v421_v5   ;;  %474 = vperm.xlu0 %1341, %v416_v7  }
  0x29   : > { %1334 = vset.pattern.permute.xlu2 %v1412_v2 }
  0x2a   : > { %1333 = vset.pattern.permute.xlu1 %v1412_v2  ;;  %1344 = vset.pattern.permute.xlu0 %v1414_v8 }
  0x2b   : > { %539 = vperm.xlu1 %1333, %v420_v6   ;;  %543 = vperm.xlu2 %1334, %v421_v5  }
  0x2c   : > { %456 = vperm.xlu0 %1344, %v422_v0  }
  0x33   : > { %1335 = vset.pattern.permute.xlu1 %v1414_v8  ;;  %1336 = vset.pattern.permute.xlu2 %v1414_v8 }
  0x34   : > { %461 = vperm.xlu0 %1344, %v423_v4   ;;  %608 = vperm.xlu2 %1336, %v1542_v9  }
  0x35   : > { %603 = vperm.xlu1 %1335, %v1545_v10  }
  0x3c   : > { %446 = vperm.xlu0 %1344, %v420_v6   ;;  %1337 = vset.pattern.permute.xlu2 %v1413_v3 }
  0x3d   : > { %441 = vperm.xlu1 %1335, %v419_v1   ;;  %482 = vperm.xlu2 %1337, %v418_v11  }
  0x44   : > { %436 = vperm.xlu0 %1344, %v418_v11  }
  0x45   : > { %1338 = vset.pattern.permute.xlu1 %v1413_v3  ;;  %1339 = vset.pattern.permute.xlu2 %v1412_v2 }
  0x46   : > { %486 = vperm.xlu1 %1338, %v419_v1   ;;  %531 = vperm.xlu2 %1339, %v418_v11  }
  0x4c   : > { %588 = vperm.xlu0 %1344, %v1558_v12  }
  0x4e   : > { %1342 = vset.pattern.permute.xlu1 %v1414_v8  ;;  %1343 = vset.pattern.permute.xlu2 %v1414_v8 }
  0x4f   : > { %593 = vperm.xlu1 %1342, %v1562_v13   ;;  %598 = vperm.xlu2 %1343, %v1565_v14  }
  0x54   : > { %666 = vperm.xlu0 %1344, %v1574_v15  }
  0x57   : > { %426 = vperm.xlu1 %1342, %v416_v7   ;;  %431 = vperm.xlu2 %1343, %v417_v16  }
  0x5c   : > { %651 = vperm.xlu0 %1344, %v1583_v17  }
  0x5f   : > { %1345 = vset.pattern.permute.xlu1 %v1413_v3  ;;  %1346 = vset.pattern.permute.xlu2 %v1412_v2 }
  0x60   : > { %478 = vperm.xlu1 %1345, %v417_v16   ;;  %523 = vperm.xlu2 %1346, %v416_v7  }
  0x64   : > { %752 = vperm.xlu0 %1344, %v1591_v18  }
  0x68   : > { %1347 = vset.pattern.permute.xlu1 %v1412_v2  ;;  %1348 = vset.pattern.permute.xlu2 %v1414_v8 }
  0x69   : > { %527 = vperm.xlu1 %1347, %v417_v16   ;;  %583 = vperm.xlu2 %1348, %v1595_v19  }
  0x6a   : > { %v548_v21 = vpop.permute.xlu2 %547 }
  0x6b   : > { %v561_v55 = vmul.f32 %v1687_v51, %v548_v21 }
  0x6c   : > { %813 = vperm.xlu0 %1344, %v1603_v20  }
  0x71   : > { %1349 = vset.pattern.permute.xlu1 %v1414_v8  ;;  %578 = vperm.xlu2 %1348, %v1607_v22  }
  0x72   : > { %573 = vperm.xlu1 %1349, %v1610_v23   ;;  %v552_v25 = vpop.permute.xlu2 %551 }
  0x73   : > { %v562_v59 = vmul.f32 %v1687_v51, %v552_v25 }
  0x74   : > { %793 = vperm.xlu0 %1344, %v1617_v24  }
  0x79   : > { %671 = vperm.xlu2 %1348, %v1624_v26  }
  0x7a   : > { %676 = vperm.xlu1 %1349, %v1629_v27  }
  0x7b   : > { %v1633_v28 = vpop.permute.xlu2 %490 }
  0x7c   : > { %1366 = vset.pattern.permute.xlu0 %v1413_v3 }
  0x7d   : > { %860 = vperm.xlu0 %1366, %v784_v29  }
  0x81   : > { %656 = vperm.xlu2 %1348, %v1642_v30  }
  0x82   : > { %661 = vperm.xlu1 %1349, %v1647_v31  }
  0x83   : > { %v499_v32 = vpop.permute.xlu1 %498  ;;  %v1651_v33 = vpop.permute.xlu0 %535 }
  0x84   : > { %v512_v52 = vmul.f32 %v1681_v47, %v499_v32 }
  0x85   : > { %v544_v34 = vpop.permute.xlu2 %543  ;;  %958 = vperm.xlu0 %1366, %v1545_v10  }
  0x89   : > { %641 = vperm.xlu2 %1348, %v1657_v35  }
  0x8a   : > { %646 = vperm.xlu1 %1349, %v1662_v36  }
  0x8b   : > { %v503_v37 = vpop.permute.xlu1 %502 }
  0x8c   : > { %v495_v38 = vpop.permute.xlu0 %494  ;;  %v513_v56 = vmul.f32 %v1681_v47, %v503_v37  ;;  %v560_v37 = vmul.f32 %v1687_v51, %v544_v34 }
  0x8d   : > { %v511_v16 = vmul.f32 %v1681_v47, %v495_v38 }
  0x8e   : > { %v609_v39 = vpop.permute.xlu2 %608 }
  0x91   : > { %823 = vperm.xlu2 %1348, %v785_v40  }
  0x92   : > { %818 = vperm.xlu1 %1349, %v784_v29  }
  0x94   : > { %v452_v41 = vpop.permute.xlu1 %451  ;;  %v1673_v42 = vpop.permute.xlu0 %474 }
  0x95   : > { %v470_v21 = vmul.f32 %v1683_v48, %v452_v41  ;;  %v558_v41 = vmul.f32 %v1687_v51, %v1651_v33 }
  0x97   : > { %v483_v43 = vpop.permute.xlu2 %482 }
  0x99   : > { %1351 = vset.pattern.permute.xlu2 %v1412_v2 }
  0x9a   : > { %1350 = vset.pattern.permute.xlu1 %v1413_v3  ;;  %909 = vperm.xlu2 %1351, %v784_v29  }
  0x9b   : > { %864 = vperm.xlu1 %1350, %v785_v40  }
  0x9d   : > { %v540_v45 = vpop.permute.xlu1 %539 }
  0x9e   : > { %v457_v46 = vpop.permute.xlu0 %456  ;;  %v559_v34 = vmul.f32 %v1687_v51, %v540_v45 }
  0x9f   : > { %v471_v50 = vmul.f32 %v1683_v48, %v457_v46  ;;  %v510_v46 = vmul.f32 %v1681_v47, %v1633_v28 }
  0xa0   : > { %v532_v49 = vpop.permute.xlu2 %531 }
  0xa1   : > { %v520_v53 = vadd.f32 %v512_v52, %v471_v50 }
  0xa2   : > { %1353 = vset.pattern.permute.xlu2 %v1414_v8 }
  0xa3   : > { %1352 = vset.pattern.permute.xlu1 %v1412_v2  ;;  %v569_v61 = vadd.f32 %v561_v55, %v520_v53  ;;  %v508_v53 = vmul.f32 %v1681_v47, %v483_v43 }
  0xa4   : > { %913 = vperm.xlu1 %1352, %v785_v40   ;;  %v519_v40 = vadd.f32 %v511_v16, %v470_v21 }
  0xa6   : > { %v462_v54 = vpop.permute.xlu0 %461  ;;  %v568_v55 = vadd.f32 %v560_v37, %v519_v40  ;;  %v506_v37 = vmul.f32 %v1681_v47, %v1673_v42  ;;  %v1272_v42 = vld [vmem:[%s1828_s3 + $0x18] sm:$0xff] }
  0xa7   : > { %v472_v57 = vmul.f32 %v1683_v48, %v462_v54  ;;  %v604_v58 = vpop.permute.xlu1 %603 }
  0xa8   : > { %v617_v0 = vadd.f32 %v604_v58, %v569_v61 }
  0xa9   : > { %v521_v60 = vadd.f32 %v513_v56, %v472_v57  ;;  %v599_v62 = vpop.permute.xlu2 %598  ;;  %v557_v56 = vmul.f32 %v1687_v51, %v532_v49 }
  0xaa   : > { %v625_v5 = vmax.f32 %v617_v0, 0.0 }
  0xab   : > { %v570_v63 = vadd.f32 %v562_v59, %v521_v60  ;;  %v616_v60 = vadd.f32 %v599_v62, %v568_v55 }
  0xac   : > { %1354 = vset.pattern.permute.xlu1 %v1413_v3 }
  0xad   : > { %v618_v1 = vadd.f32 %v609_v39, %v570_v63 }
  0xae   : > { %v447_v4 = vpop.permute.xlu0 %446 }
  0xaf   : > { %v442_v6 = vpop.permute.xlu1 %441  ;;  %v626_v7 = vmax.f32 %v618_v1, 0.0  ;;  %v469_v29 = vmul.f32 %v1683_v48, %v447_v4 }
  0xb0   : > { %v468_v39 = vmul.f32 %v1683_v48, %v442_v6 }
  0xb1   : > { %v638_v10 = vpack.c.bf16 %v626_v7, %v625_v5  ;;  %v432_v11 = vpop.permute.xlu2 %431  ;;  %v518_v54 = vadd.f32 %v510_v46, %v469_v29  ;;  %v624_v5 = vmax.f32 %v616_v60, 0.0 }
  0xb2   : > { %v466_v21 = vmul.f32 %v1683_v48, %v432_v11 }
  0xb3   : > { %716 = vmatpush.bf16.msra.mxu0 %v638_v10  ;;  %1277 = vmatpush.bf16.msra.mxu1 %v638_v10  ;;  %v567_v28 = vadd.f32 %v559_v34, %v518_v54 }
  0xb6   : > { %v437_v25 = vpop.permute.xlu0 %436 }
  0xb7   : > { %v467_v50 = vmul.f32 %v1683_v48, %v437_v25 }
  0xb8   : > { %v487_v32 = vpop.permute.xlu1 %486 }
  0xb9   : > { %v509_v44 = vmul.f32 %v1681_v47, %v487_v32  ;;  %v516_v57 = vadd.f32 %v508_v53, %v467_v50 }
  0xba   : > { %v524_v52 = vpop.permute.xlu2 %523 }
  0xbb   : > { %v517_v38 = vadd.f32 %v509_v44, %v468_v39  ;;  %v565_v1 = vadd.f32 %v557_v56, %v516_v57  ;;  %v555_v39 = vmul.f32 %v1687_v51, %v524_v52  ;;  %v1271_v52 = vld [vmem:[%s1828_s3 + $0x10] sm:$0xff]  ;;  %v781_v56 = vld [vmem:[%s1830_s5 + $0x18] sm:$0xff] }
  0xbc   : > { %848 = vperm.xlu0 %1366, %v781_v56  }
  0xbd   : > { %v566_v58 = vadd.f32 %v558_v41, %v517_v38 }
  0xbe   : > { %v589_v59 = vpop.permute.xlu0 %588 }
  0xbf   : > { %v614_v63 = vadd.f32 %v589_v59, %v566_v58 }
  0xc1   : > { %v594_v61 = vpop.permute.xlu1 %593  ;;  %v622_v43 = vmax.f32 %v614_v63, 0.0 }
  0xc2   : > { %v615_v0 = vadd.f32 %v594_v61, %v567_v28 }
  0xc3   : > { %v584_v4 = vpop.permute.xlu2 %583 }
  0xc4   : > { %v623_v33 = vmax.f32 %v615_v0, 0.0  ;;  %v613_v6 = vadd.f32 %v584_v4, %v565_v1  ;;  %950 = vperm.xlu0 %1366, %v1562_v13  }
  0xc6   : > { %v621_v7 = vmax.f32 %v613_v6, 0.0  ;;  %v637_v10 = vpack.c.bf16 %v624_v5, %v623_v33 }
  0xc8   : > { %717 = vmatpush.bf16.msra.mxu0 %v637_v10  ;;  %1278 = vmatpush.bf16.msra.mxu1 %v637_v10  ;;  %v636_v45 = vpack.c.bf16 %v622_v43, %v621_v7 }
  0xc9   : > { %v427_v49 = vpop.permute.xlu1 %426 }
  0xca   : > { %v465_v25 = vmul.f32 %v1683_v48, %v427_v49  ;;  %v1269_v48 = vld [vmem:[%s1828_s3] sm:$0xff] }
  0xcb   : > { %v579_v50 = vpop.permute.xlu2 %578 }
  0xcc   : > { %718 = vmatpush.bf16.msra.mxu0 %v636_v45  ;;  %1279 = vmatpush.bf16.msra.mxu1 %v636_v45  ;;  %v514_v44 = vadd.f32 %v506_v37, %v465_v25 }
  0xcd   : > { %942 = vperm.xlu0 %1366, %v1595_v19  }
  0xce   : > { %v563_v38 = vadd.f32 %v555_v39, %v514_v44 }
  0xd2   : > { %v479_v16 = vpop.permute.xlu1 %478 }
  0xd3   : > { %v507_v62 = vmul.f32 %v1681_v47, %v479_v16  ;;  %v782_v47 = vld [vmem:[%s1830_s5 + $0x20] sm:$0xff]  ;;  %v672_v19 = vpop.permute.xlu2 %671 }
  0xd4   : > { %852 = vperm.xlu1 %1354, %v782_v47   ;;  %808 = vperm.xlu2 %1353, %v782_v47  }
  0xd5   : > { %v515_v40 = vadd.f32 %v507_v62, %v466_v21  ;;  %1018 = vperm.xlu0 %1366, %v1624_v26  }
  0xdb   : > { %v528_v29 = vpop.permute.xlu1 %527 }
  0xdc   : > { %v556_v32 = vmul.f32 %v1687_v51, %v528_v29  ;;  %1356 = vset.pattern.permute.xlu1 %v1412_v2  ;;  %1355 = vset.pattern.permute.xlu2 %v1413_v3  ;;  %v1270_v51 = vld [vmem:[%s1828_s3 + $0x8] sm:$0xff] }
  0xdd   : > { %901 = vperm.xlu1 %1356, %v782_v47   ;;  %856 = vperm.xlu2 %1355, %v1603_v20  }
  0xde   : > { %v564_v46 = vadd.f32 %v556_v32, %v515_v40  ;;  %1006 = vperm.xlu0 %1366, %v1642_v30  }
  0xe0   : > { %v612_v41 = vadd.f32 %v579_v50, %v564_v46 }
  0xe2   : > { %v620_v11 = vmax.f32 %v612_v41, 0.0 }
  0xe4   : > { %v574_v53 = vpop.permute.xlu1 %573 }
  0xe5   : > { %v611_v54 = vadd.f32 %v574_v53, %v563_v38  ;;  %1358 = vset.pattern.permute.xlu1 %v1413_v3  ;;  %1357 = vset.pattern.permute.xlu2 %v1412_v2 }
  0xe6   : > { %962 = vperm.xlu1 %1358, %v1542_v9   ;;  %905 = vperm.xlu2 %1357, %v1603_v20   ;;  %v780_v9 = vld [vmem:[%s1830_s5 + $0x10] sm:$0xff]  ;;  %v778_v20 = vld [vmem:[%s1830_s5] sm:$0xff] }
  0xe7   : > { %v619_v55 = vmax.f32 %v611_v54, 0.0  ;;  %994 = vperm.xlu0 %1366, %v1657_v35   ;;  %v667_v35 = vpop.permute.xlu0 %666 }
  0xe9   : > { %v635_v34 = vpack.c.bf16 %v620_v11, %v619_v55 }
  0xeb   : > { %719 = vmatpush.bf16.msra.mxu0 %v635_v34  ;;  %1280 = vmatpush.bf16.msra.mxu1 %v635_v34 }
  0xec   : > { %v677_v58 = vpop.permute.xlu1 %676 }
  0xee   : > { %1240 = vmatmul.msk.bf16.vlgmr.msra.gmra.mxu0 %vm699_vm0, %v1269_v48  ;;  %1243 = vmatmul.msk.bf16.vlgmr.msra.gmra.mxu1 %vm699_vm0, %v1272_v42 }
  0xef   : > { %1360 = vset.pattern.permute.xlu1 %v1414_v8  ;;  %1359 = vset.pattern.permute.xlu2 %v1414_v8 }
  0xf0   : > { %803 = vperm.xlu1 %1360, %v781_v56   ;;  %798 = vperm.xlu2 %1359, %v780_v9  }
  0xf4   : > { %v662_v0 = vpop.permute.xlu1 %661 }
  0xf8   : > { %1362 = vset.pattern.permute.xlu1 %v1412_v2  ;;  %1361 = vset.pattern.permute.xlu2 %v1413_v3 }
  0xf9   : > { %893 = vperm.xlu1 %1362, %v780_v9   ;;  %844 = vperm.xlu2 %1361, %v780_v9  }
  0xfe   : > { %1241 = vmatmul.msk.bf16.gmra.mxu0 %vm699_vm0, %v1270_v51 }
 0x101   : > { %1364 = vset.pattern.permute.xlu1 %v1413_v3  ;;  %1363 = vset.pattern.permute.xlu2 %v1412_v2 }
 0x102   : > { %954 = vperm.xlu1 %1364, %v1565_v14   ;;  %897 = vperm.xlu2 %1363, %v781_v56  }
 0x10a   : > { %836 = vperm.xlu1 %1364, %v778_v20   ;;  %1365 = vset.pattern.permute.xlu2 %v1414_v8 }
 0x10b   : > { %788 = vperm.xlu2 %1365, %v778_v20  }
 0x10e   : > { %1242 = vmatmul.msk.bf16.gmra.mxu0 %vm699_vm0, %v1271_v52 }
 0x112   : > { %1368 = vset.pattern.permute.xlu1 %v1412_v2 }
 0x113   : > { %885 = vperm.xlu1 %1368, %v778_v20   ;;  %1367 = vset.pattern.permute.xlu2 %v1413_v3 }
 0x114   : > { %840 = vperm.xlu2 %1367, %v1617_v24  }
 0x11b   : > { %1370 = vset.pattern.permute.xlu1 %v1413_v3 }
 0x11c   : > { %946 = vperm.xlu1 %1370, %v1558_v12   ;;  %1369 = vset.pattern.permute.xlu2 %v1412_v2  ;;  %v657_v12 = vpop.permute.xlu2 %656  ;;  %v652_v2 = vpop.permute.xlu0 %651 }
 0x11d   : > { %889 = vperm.xlu2 %1369, %v1617_v24  }
 0x124   : > { %938 = vperm.xlu1 %1370, %v1607_v22   ;;  %v642_v7 = vpop.permute.xlu2 %641  ;;  %v753_v37 = vpop.permute.xlu0 %752 }
 0x125   : > { %1371 = vset.pattern.permute.xlu2 %v1413_v3 }
 0x126   : > { %934 = vperm.xlu2 %1371, %v1610_v23  }
 0x12c   : > { %1014 = vperm.xlu1 %1370, %v1574_v15   ;;  %v647_v15 = vpop.permute.xlu1 %646  ;;  %v824_v62 = vpop.permute.xlu2 %823 }
 0x12d   : > { %v814_v44 = vpop.permute.xlu0 %813 }
 0x12e   : > { %1022 = vperm.xlu2 %1371, %v1629_v27   ;;  %v749_v27 = vld [vmem:[%s1829_s4] sm:$0x7] }
 0x134   : > { %1002 = vperm.xlu1 %1370, %v1583_v17   ;;  %v819_v49 = vpop.permute.xlu1 %818  ;;  %v910_v21 = vpop.permute.xlu2 %909 }
 0x135   : > { %v794_v38 = vpop.permute.xlu0 %793 }
 0x136   : > { %1010 = vperm.xlu2 %1371, %v1647_v31  }
 0x13c   : > { %1096 = vperm.xlu1 %1370, %v1591_v18   ;;  %v865_v16 = vpop.permute.xlu1 %864  ;;  %v809_v25 = vpop.permute.xlu2 %808 }
 0x13d   : > { %v861_v54 = vpop.permute.xlu0 %860 }
 0x13e   : > { %998 = vperm.xlu2 %1371, %v1662_v36  }
 0x144   : > { %v914_v18 = vpop.permute.xlu1 %913  ;;  %v857_v32 = vpop.permute.xlu2 %856 }
 0x145   : > { %v959_v11 = vpop.permute.xlu0 %958 }
 0x14c   : > { %v853_v29 = vpop.permute.xlu1 %852  ;;  %v906_v40 = vpop.permute.xlu2 %905 }
 0x14d   : > { %v849_v42 = vpop.permute.xlu0 %848 }
 0x154   : > { %v902_v31 = vpop.permute.xlu1 %901  ;;  %v799_v46 = vpop.permute.xlu2 %798 }
 0x15c   : > { %v963_v39 = vpop.permute.xlu1 %962  ;;  %v845_v41 = vpop.permute.xlu2 %844 }
 0x164   : > { %v804_v50 = vpop.permute.xlu1 %803  ;;  %v898_v36 = vpop.permute.xlu2 %897 }
 0x16b   : > { %v721_v13 = vpop.f32.mrf.mxu0  ;;  %v736_v57 = vpop.f32.mrf.mxu1 }
 0x16c   : > { %v737_v60 = vadd.f32 %v736_v57, %v672_v19  ;;  %v722_v23 = vadd.f32 %v721_v13, %v642_v7  ;;  %v894_v53 = vpop.permute.xlu1 %893  ;;  %v789_v34 = vpop.permute.xlu2 %788 }
 0x16d   : > { %v951_v57 = vpop.permute.xlu0 %950 }
 0x16e   : > { %v747_v61 = vmax.f32 %v737_v60, 0.0  ;;  %v741_v17 = vmax.f32 %v722_v23, 0.0 }
 0x173   : > { %v723_v14 = vpop.f32.mrf.mxu0  ;;  %v738_v59 = vpop.f32.mrf.mxu1 }
 0x174   : > { %v739_v28 = vadd.f32 %v738_v59, %v677_v58  ;;  %v724_v43 = vadd.f32 %v723_v14, %v647_v15  ;;  %v955_v55 = vpop.permute.xlu1 %954  ;;  %v841_v47 = vpop.permute.xlu2 %840 }
 0x176   : > { %v748_v26 = vmax.f32 %v739_v28, 0.0  ;;  %v742_v45 = vmax.f32 %v724_v43, 0.0 }
 0x178   : > { %766 = vmatpush.msrb.mxu1 %v748_v26 }
 0x17a   : > { %767 = vmatpush.msrb.mxu1 %v747_v61 }
 0x17b   : > { %v726_v63 = vpop.f32.mrf.mxu0 }
 0x17c   : > { %v727_v24 = vadd.f32 %v726_v63, %v652_v2  ;;  %v837_v48 = vpop.permute.xlu1 %836 }
 0x17e   : > { %v743_v10 = vmax.f32 %v727_v24, 0.0 }
 0x183   : > { %v728_v30 = vpop.f32.mrf.mxu0 }
 0x184   : > { %v729_v22 = vadd.f32 %v728_v30, %v657_v12 }
 0x185   : > { %v886_v51 = vpop.permute.xlu1 %885 }
 0x186   : > { %v744_v3 = vmax.f32 %v729_v22, 0.0 }
 0x18b   : > { %v731_v8 = vpop.f32.mrf.mxu0 }
 0x18c   : > { %v732_v4 = vadd.f32 %v731_v8, %v662_v0 }
 0x18e   : > { %v745_v6 = vmax.f32 %v732_v4, 0.0 }
 0x193   : > { %v733_v1 = vpop.f32.mrf.mxu0 }
 0x194   : > { %v734_v5 = vadd.f32 %v733_v1, %v667_v35 }
 0x196   : > { %v746_v33 = vmax.f32 %v734_v5, 0.0  ;;  %v890_v5 = vpop.permute.xlu2 %889 }
 0x198   : > { %768 = vmatpush.msrb.mxu1 %v746_v33 }
 0x19a   : > { %769 = vmatpush.msrb.mxu1 %v745_v6  ;;  %v947_v6 = vpop.permute.xlu1 %946 }
 0x19c   : > { %770 = vmatpush.msrb.mxu1 %v744_v3 }
 0x19e   : > { %771 = vmatpush.msrb.mxu1 %v743_v10 }
 0x1a0   : > { %772 = vmatpush.msrb.mxu1 %v742_v45 }
 0x1a2   : > { %773 = vmatpush.msrb.mxu1 %v741_v17 }
 0x1a3   : > { %1244 = vmatmul.msk.f32.vlgmr.msrb.gmra.mxu1 %vm699_vm0, %v749_v27 }
 0x220   : > { %v775_v52 = vpop.f32.mrf.mxu1 }
 0x221   : > { %v776_v56 = vadd.f32 %v775_v52, %v753_v37 }
 0x223   : > { %v826_v9 = vperm.slane %v776_v56, 0  ;;  %v867_v20 = vperm.slane %v776_v56, 1  ;;  %v916_v13 = vperm.slane %v776_v56, 2 }
 0x225   : > { %v833_v19 = vmul.f32 %v826_v9, %v819_v49  ;;  %v834_v58 = vmul.f32 %v826_v9, %v824_v62  ;;  %v874_v14 = vmul.f32 %v867_v20, %v861_v54  ;;  %v875_v59 = vmul.f32 %v867_v20, %v865_v16 }
 0x226   : > { %v923_v60 = vmul.f32 %v916_v13, %v910_v21  ;;  %v924_v28 = vmul.f32 %v916_v13, %v914_v18  ;;  %v831_v26 = vmul.f32 %v826_v9, %v809_v25  ;;  %v832_v61 = vmul.f32 %v826_v9, %v814_v44  ;;  %v943_v44 = vpop.permute.xlu0 %942 }
 0x227   : > { %v882_v63 = vadd.f32 %v874_v14, %v833_v19  ;;  %v883_v30 = vadd.f32 %v875_v59, %v834_v58  ;;  %v872_v8 = vmul.f32 %v867_v20, %v853_v29  ;;  %v873_v35 = vmul.f32 %v867_v20, %v857_v32  ;;  %v1276_v14 = vld [vmem:[%s1831_s6 + $0x18] sm:$0xff]  ;;  %v1274_v59 = vld [vmem:[%s1831_s6 + $0x8] sm:$0xff] }
 0x228   : > { %v921_v0 = vmul.f32 %v916_v13, %v902_v31  ;;  %v922_v12 = vmul.f32 %v916_v13, %v906_v40  ;;  %v829_v1 = vmul.f32 %v826_v9, %v799_v46  ;;  %v830_v4 = vmul.f32 %v826_v9, %v804_v50 }
 0x229   : > { %v931_v22 = vadd.f32 %v923_v60, %v882_v63  ;;  %v932_v33 = vadd.f32 %v924_v28, %v883_v30  ;;  %v880_v2 = vadd.f32 %v872_v8, %v831_v26  ;;  %v881_v24 = vadd.f32 %v873_v35, %v832_v61  ;;  %v1275_v60 = vld [vmem:[%s1831_s6 + $0x10] sm:$0xff] }
 0x22a   : > { %v870_v15 = vmul.f32 %v867_v20, %v845_v41  ;;  %v871_v43 = vmul.f32 %v867_v20, %v849_v42  ;;  %v919_v3 = vmul.f32 %v916_v13, %v894_v53  ;;  %v920_v7 = vmul.f32 %v916_v13, %v898_v36  ;;  %v935_v42 = vpop.permute.xlu2 %934 }
 0x22b   : > { %v971_v23 = vadd.f32 %v959_v11, %v931_v22  ;;  %v972_v10 = vadd.f32 %v963_v39, %v932_v33  ;;  %v929_v45 = vadd.f32 %v921_v0, %v880_v2  ;;  %v930_v17 = vadd.f32 %v922_v12, %v881_v24 }
 0x22c   : > { %v878_v27 = vadd.f32 %v870_v15, %v829_v1  ;;  %v879_v49 = vadd.f32 %v871_v43, %v830_v4  ;;  %v827_v16 = vmul.f32 %v826_v9, %v789_v34  ;;  %v828_v62 = vmul.f32 %v826_v9, %v794_v38 }
 0x22d   : > { %v979_v21 = vmax.f32 %v971_v23, 0.0  ;;  %v980_v18 = vmax.f32 %v972_v10, 0.0  ;;  %v969_v25 = vadd.f32 %v951_v57, %v929_v45  ;;  %v970_v29 = vadd.f32 %v955_v55, %v930_v17 }
 0x22e   : > { %v927_v32 = vadd.f32 %v919_v3, %v878_v27  ;;  %v928_v31 = vadd.f32 %v920_v7, %v879_v49  ;;  %v868_v37 = vmul.f32 %v867_v20, %v837_v48  ;;  %v869_v40 = vmul.f32 %v867_v20, %v841_v47  ;;  %v939_v48 = vpop.permute.xlu1 %938  ;;  %v1019_v61 = vpop.permute.xlu0 %1018 }
 0x22f   : > { %v992_v46 = vpack.c.bf16 %v980_v18, %v979_v21  ;;  %v977_v50 = vmax.f32 %v969_v25, 0.0  ;;  %v978_v41 = vmax.f32 %v970_v29, 0.0  ;;  %v917_v53 = vmul.f32 %v916_v13, %v886_v51  ;;  %v1094_v29 = vld [vmem:[%s1832_s7] sm:$0x7] }
 0x230   : > { %v967_v39 = vadd.f32 %v943_v44, %v927_v32  ;;  %v968_v54 = vadd.f32 %v947_v6, %v928_v31  ;;  %v876_v36 = vadd.f32 %v868_v37, %v827_v16  ;;  %v877_v11 = vadd.f32 %v869_v40, %v828_v62 }
 0x231   : > { %1061 = vmatpush.bf16.msra.mxu2 %v992_v46  ;;  %1281 = vmatpush.bf16.msra.mxu3 %v992_v46  ;;  %v918_v38 = vmul.f32 %v916_v13, %v890_v5  ;;  %v991_v52 = vpack.c.bf16 %v978_v41, %v977_v50  ;;  %v1273_v13 = vld [vmem:[%s1831_s6] sm:$0xff] }
 0x232   : > { %v925_v34 = vadd.f32 %v917_v53, %v876_v36  ;;  %v975_v55 = vmax.f32 %v967_v39, 0.0  ;;  %v976_v56 = vmax.f32 %v968_v54, 0.0  ;;  %v1023_v63 = vpop.permute.xlu2 %1022 }
 0x233   : > { %v926_v9 = vadd.f32 %v918_v38, %v877_v11 }
 0x234   : > { %v965_v47 = vadd.f32 %v935_v42, %v925_v34  ;;  %v990_v57 = vpack.c.bf16 %v976_v56, %v975_v55 }
 0x235   : > { %1062 = vmatpush.bf16.msra.mxu2 %v991_v52  ;;  %1282 = vmatpush.bf16.msra.mxu3 %v991_v52  ;;  %v966_v20 = vadd.f32 %v939_v48, %v926_v9 }
 0x236   : > { %v973_v51 = vmax.f32 %v965_v47, 0.0  ;;  %v1015_v33 = vpop.permute.xlu1 %1014  ;;  %v1007_v24 = vpop.permute.xlu0 %1006 }
 0x237   : > { %v974_v19 = vmax.f32 %v966_v20, 0.0 }
 0x239   : > { %1063 = vmatpush.bf16.msra.mxu2 %v990_v57  ;;  %1283 = vmatpush.bf16.msra.mxu3 %v990_v57  ;;  %v989_v58 = vpack.c.bf16 %v974_v19, %v973_v51 }
 0x23a   : > { %v1011_v2 = vpop.permute.xlu2 %1010 }
 0x23d   : > { %1064 = vmatpush.bf16.msra.mxu2 %v989_v58  ;;  %1284 = vmatpush.bf16.msra.mxu3 %v989_v58 }
 0x23e   : > { %v1003_v23 = vpop.permute.xlu1 %1002  ;;  %v995_v16 = vpop.permute.xlu0 %994 }
 0x240   : > { %1261 = vmatmul.msk.bf16.vlgmr.msra.gmra.mxu2 %vm699_vm0, %v1273_v13  ;;  %1264 = vmatmul.msk.bf16.vlgmr.msra.gmra.mxu3 %vm699_vm0, %v1276_v14 }
 0x242   : > { %v999_v17 = vpop.permute.xlu2 %998 }
 0x246   : > { %v1097_v32 = vpop.permute.xlu1 %1096 }
 0x250   : > { %1262 = vmatmul.msk.bf16.gmra.mxu2 %vm699_vm0, %v1274_v59 }
 0x260   : > { %1263 = vmatmul.msk.bf16.gmra.mxu2 %vm699_vm0, %v1275_v60 }
 0x2c3   : > { %v1066_v28 = vpop.f32.mrf.mxu2  ;;  %v1081_v26 = vpop.f32.mrf.mxu3 }
 0x2c4   : > { %v1082_v35 = vadd.f32 %v1081_v26, %v1019_v61  ;;  %v1067_v62 = vadd.f32 %v1066_v28, %v995_v16 }
 0x2c6   : > { %v1092_v1 = vmax.f32 %v1082_v35, 0.0  ;;  %v1086_v25 = vmax.f32 %v1067_v62, 0.0 }
 0x2cb   : > { %v1068_v30 = vpop.f32.mrf.mxu2  ;;  %v1083_v8 = vpop.f32.mrf.mxu3 }
 0x2cc   : > { %v1084_v0 = vadd.f32 %v1083_v8, %v1023_v63  ;;  %v1069_v27 = vadd.f32 %v1068_v30, %v999_v17 }
 0x2ce   : > { %v1093_v12 = vmax.f32 %v1084_v0, 0.0  ;;  %v1087_v18 = vmax.f32 %v1069_v27, 0.0 }
 0x2d0   : > { %1110 = vmatpush.msrb.mxu3 %v1093_v12 }
 0x2d2   : > { %1111 = vmatpush.msrb.mxu3 %v1092_v1 }
 0x2d3   : > { %v1071_v4 = vpop.f32.mrf.mxu2 }
 0x2d4   : > { %v1072_v10 = vadd.f32 %v1071_v4, %v1003_v23 }
 0x2d6   : > { %v1088_v21 = vmax.f32 %v1072_v10, 0.0 }
 0x2db   : > { %v1073_v5 = vpop.f32.mrf.mxu2 }
 0x2dc   : > { %v1074_v3 = vadd.f32 %v1073_v5, %v1007_v24 }
 0x2de   : > { %v1089_v49 = vmax.f32 %v1074_v3, 0.0 }
 0x2e3   : > { %v1076_v22 = vpop.f32.mrf.mxu2 }
 0x2e4   : > { %v1077_v15 = vadd.f32 %v1076_v22, %v1011_v2 }
 0x2e6   : > { %v1090_v45 = vmax.f32 %v1077_v15, 0.0 }
 0x2eb   : > { %v1078_v6 = vpop.f32.mrf.mxu2 }
 0x2ec   : > { %v1079_v43 = vadd.f32 %v1078_v6, %v1015_v33 }
 0x2ee   : > { %v1091_v7 = vmax.f32 %v1079_v43, 0.0 }
 0x2f0   : > { %1112 = vmatpush.msrb.mxu3 %v1091_v7 }
 0x2f2   : > { %1113 = vmatpush.msrb.mxu3 %v1090_v45 }
 0x2f4   : > { %1114 = vmatpush.msrb.mxu3 %v1089_v49 }
 0x2f6   : > { %1115 = vmatpush.msrb.mxu3 %v1088_v21 }
 0x2f8   : > { %1116 = vmatpush.msrb.mxu3 %v1087_v18 }
 0x2fa   : > { %1117 = vmatpush.msrb.mxu3 %v1086_v25 }
 0x2fb   : > { %1265 = vmatmul.msk.f32.vlgmr.msrb.gmra.mxu3 %vm699_vm0, %v1094_v29 }
 0x37e   : > { %v1119_v31 = vpop.f32.mrf.mxu3 }
 0x37f   : > { %v1120_v37 = vadd.f32 %v1119_v31, %v1097_v32 }
 0x381   : > { %1122 = vst [vmem:[%s396_s26] sm:$0x7] %v1120_v37 }
 0x382 PF: > { %s20_s17 = sadd.s32 1, %s1410_s17   ;;  %s1836_s13 = smov %s1402_s15 }
 0x383   : > { %p17_p7 = scmp.ge.s32.totalorder %s20_s17, 12   ;;  %s1837_s14 = smov %s1406_s16 }
 0x384   : > { %s1838_s15 = smov %s1841_s18  ;;  %s1839_s16 = smov %s1845_s19 }
 0x385   :  { %19 = sbr.rel (!%p17_p7) target bundleno = 3 (0x3), region = 93 }

</bundles_post_ra>
